<compile_context>
chip_gen: v5e
topology: v5e:2x2
jax: 0.10.0
libtpu: 0.0.40
codegen_flags: <defaults>
</compile_context>

<pallas_src>
import jax
import jax.numpy as jnp
from jax import lax
from jax.experimental import pallas as pl
from jax.experimental.pallas import tpu as pltpu

LN_EPS = 1e-5  # F.layer_norm default


# ----------------------------------------------------------------------------
# Pallas kernel: per-sample  W(N,K) @ patches(K,HW) + bias -> layernorm -> relu
# ----------------------------------------------------------------------------
def gconv_block_kernel(p_ref, w_ref, b_ref, o_ref):
    # p_ref : (1, K, HW)  bf16   im2col patches for one batch sample
    # w_ref : (N, K)      bf16   flattened group-transformed conv weights
    # b_ref : (N, 1)      f32    per-(out-channel, group-element) bias
    # o_ref : (1, N, HW)  f32
    p = p_ref[0]                      # (K, HW)
    w = w_ref[...]                    # (N, K)

    # bf16 MXU matmul, f32 accumulator; output last dim HW is lane-dense.
    y = jnp.dot(w, p, preferred_element_type=jnp.float32) + b_ref[...]   # (N, HW) f32

    # LayerNorm over ALL non-batch dims of the NCGHW output == full reduction
    # over this (N, HW) tile. Single sweep: sum & sum-of-squares together.
    n_elems = y.shape[0] * y.shape[1]
    inv_n = 1.0 / float(n_elems)      # compile-time constant multiply, no divide
    s = jnp.sum(y)
    ss = jnp.sum(y * y)
    mean = s * inv_n
    var = ss * inv_n - mean * mean
    y_norm = (y - mean) * lax.rsqrt(var + LN_EPS)

    o_ref[0] = jnp.maximum(y_norm, 0.0).astype(o_ref.dtype)


# ----------------------------------------------------------------------------
# Glue: weight transformation for the C4 group + K-major im2col
# ----------------------------------------------------------------------------
def expand_group_weights(w, G):
    """w: (C_out, C_in, G, k, k) -> (C_out*G, C_in*G, k, k).

    For output group element r:  W[co, r, ci, h] = rot90^r( w[co, ci, (h - r) % G] )
    """
    per_rot = []
    for r in range(G):
        w_perm = jnp.roll(w, shift=r, axis=2)            # group-dim permutation
        w_rot = jnp.rot90(w_perm, k=r, axes=(3, 4))      # spatial rotation by r*90deg
        per_rot.append(w_rot)
    w_full = jnp.stack(per_rot, axis=1)                  # (C_out, G, C_in, G, k, k)
    C_out, G_, C_in = w_full.shape[0], w_full.shape[1], w_full.shape[2]
    k = w_full.shape[-1]
    return w_full.reshape(C_out * G_, C_in * G_, k, k)


def im2col_same_kmajor(x2, k):
    """x2: (B, C, H, W) -> patches (B, C*k*k, H*W), 'same' padding, stride 1.

    K-major / HW-minor: no transpose needed, final reshape is a free view.
    """
    B, C, H, W = x2.shape
    p = k // 2
    xp = jnp.pad(x2, ((0, 0), (0, 0), (p, p), (p, p)))
    cols = [xp[:, :, ki:ki + H, kj:kj + W]               # (B, C, H, W)
            for ki in range(k) for kj in range(k)]
    stacked = jnp.stack(cols, axis=2)                    # (B, C, k*k, H, W)
    return stacked.reshape(B, C * k * k, H * W)          # (B, K, HW), contiguous


# ----------------------------------------------------------------------------
# Wrapper
# ----------------------------------------------------------------------------
def group_conv_block(x, weight, bias, G):
    """x: (B, C_in, G, H, W) float32 -> (B, C_out, G, H, W) float32."""
    B, C_in, G_, H, W = x.shape
    assert G_ == G
    C_out, _, _, k, _ = weight.shape

    x2 = x.reshape(B, C_in * G, H, W)
    w_exp = expand_group_weights(weight, G)              # (C_out*G, C_in*G, k, k)
    K = C_in * G * k * k
    N = C_out * G
    HW = H * W

    # bf16 operands for the MXU (native dtype on v5e/v6e/v7x); f32 accumulate.
    w_mat = w_exp.reshape(N, K).astype(jnp.bfloat16)               # (N, K)
    patches = im2col_same_kmajor(x2, k).astype(jnp.bfloat16)       # (B, K, HW)
    bias_exp = jnp.repeat(bias, G).reshape(N, 1).astype(jnp.float32)

    out_flat = pl.pallas_call(
        gconv_block_kernel,
        out_shape=jax.ShapeDtypeStruct((B, N, HW), jnp.float32),
        grid_spec=pltpu.PrefetchScalarGridSpec(
            num_scalar_prefetch=0,
            grid=(B,),                                   # B=2 shards across v7x's 2 TCs
            in_specs=[
                pl.BlockSpec((1, K, HW), lambda b: (b, 0, 0)),
                pl.BlockSpec((N, K), lambda b: (0, 0)),
                pl.BlockSpec((N, 1), lambda b: (0, 0)),
            ],
            out_specs=pl.BlockSpec((1, N, HW), lambda b: (b, 0, 0)),
        ),
        compiler_params=pltpu.CompilerParams(
            dimension_semantics=("parallel",),
        ),
    )(patches, w_mat, bias_exp)

    # (B, C_out*G, H*W) -> (B, C_out, G, H, W): free contiguous view, no transpose.
    return out_flat.reshape(B, C_out, G, H, W)


# ----------------------------------------------------------------------------
# Pure-JAX reference (independent conv path) for verification
# ----------------------------------------------------------------------------
def group_conv_block_ref(x, weight, bias, G, matmul_dtype=jnp.float32):
    B, C_in, G_, H, W = x.shape
    C_out, _, _, k, _ = weight.shape
    x2 = x.reshape(B, C_in * G, H, W)
    w_exp = expand_group_weights(weight, G)
    y = lax.conv_general_dilated(
        x2.astype(matmul_dtype), w_exp.astype(matmul_dtype),
        window_strides=(1, 1), padding="SAME",
        dimension_numbers=("NCHW", "OIHW", "NCHW"),
        preferred_element_type=jnp.float32)
    y = y + jnp.repeat(bias, G)[None, :, None, None]
    y = y.reshape(B, C_out, G, H, W)
    mean = jnp.mean(y, axis=(1, 2, 3, 4), keepdims=True)
    var = jnp.mean((y - mean) ** 2, axis=(1, 2, 3, 4), keepdims=True)
    y = (y - mean) / jnp.sqrt(var + LN_EPS)
    return jnp.maximum(y, 0.0)


if __name__ == "__main__":
    # Small deterministic config: C4 group (|G|=4).
    B, C_in, C_out, G, H, W, k = 2, 4, 8, 4, 16, 16, 3

    key = jax.random.PRNGKey(0)
    kx, kw, kb = jax.random.split(key, 3)
    x = jax.random.normal(kx, (B, C_in, G, H, W), dtype=jnp.float32)
    fan_in = C_in * G * k * k
    weight = jax.random.normal(kw, (C_out, C_in, G, k, k), dtype=jnp.float32) / jnp.sqrt(fan_in)
    bias = 0.1 * jax.random.normal(kb, (C_out,), dtype=jnp.float32)

    out = jax.block_until_ready(group_conv_block(x, weight, bias, G))

    # Kernel uses bf16 MXU operands (f32 accumulate), so compare against a
    # reference whose conv also uses bf16 operands (tight, deterministic check
    # of the im2col / group-expansion / LN / ReLU logic).
    ref = jax.block_until_ready(group_conv_block_ref(x, weight, bias, G,
                                                     matmul_dtype=jnp.bfloat16))

    assert out.shape == (B, C_out, G, H, W)
    max_err = float(jnp.max(jnp.abs(out - ref)))
    assert jnp.allclose(out, ref, atol=2e-2, rtol=2e-2), max_err
    print("KERNEL_OK")
</pallas_src>

<mosaic_0001>
module attributes {stable_mosaic.version = 11 : i64} {
  func.func @gconv_block_kernel(%arg0: i32, %arg1: memref<1x144x256xbf16, #tpu.memory_space<vmem>>, %arg2: memref<32x144xbf16, #tpu.memory_space<vmem>>, %arg3: memref<32x1xf32, #tpu.memory_space<vmem>>, %arg4: memref<1x32x256xf32, #tpu.memory_space<vmem>>) attributes {dimension_semantics = [#tpu.dimension_semantics<parallel>], iteration_bounds = array<i64: 2>, scalar_prefetch = 0 : i64, scratch_operands = 0 : i64, tpu.core_type = #tpu.core_type<tc>, window_params = [{transform_indices = @transform_0, window_bounds = array<i64: 1, 144, 256>}, {pipeline_mode = #tpu.pipeline_mode<synchronous>, transform_indices = @transform_1, window_bounds = array<i64: 32, 144>}, {pipeline_mode = #tpu.pipeline_mode<synchronous>, transform_indices = @transform_2, window_bounds = array<i64: 32, 1>}, {transform_indices = @transform_3, window_bounds = array<i64: 1, 32, 256>}]} {
    %c0 = arith.constant 0 : index
    %c0_0 = arith.constant 0 : index
    %c0_1 = arith.constant 0 : index
    %0 = vector.load %arg1[%c0, %c0_0, %c0_1] : memref<1x144x256xbf16, #tpu.memory_space<vmem>>, vector<1x144x256xbf16>
    %1 = vector.shape_cast %0 : vector<1x144x256xbf16> to vector<144x256xbf16>
    %c0_2 = arith.constant 0 : index
    %c0_3 = arith.constant 0 : index
    %2 = vector.load %arg2[%c0_2, %c0_3] : memref<32x144xbf16, #tpu.memory_space<vmem>>, vector<32x144xbf16>
    %cst = arith.constant dense<0.000000e+00> : vector<32x256xf32>
    %3 = tpu.matmul %2, %1, %cst {dimension_numbers = #tpu.dot_dimension_numbers<[1], [0], [0], [1], [0, 0, 1, 1], [], []>} : vector<32x144xbf16>, vector<144x256xbf16>, vector<32x256xf32> -> vector<32x256xf32>
    %c0_4 = arith.constant 0 : index
    %c0_5 = arith.constant 0 : index
    %4 = vector.load %arg3[%c0_4, %c0_5] : memref<32x1xf32, #tpu.memory_space<vmem>>, vector<32x1xf32>
    %5 = vector.broadcast %4 : vector<32x1xf32> to vector<32x256xf32>
    %6 = arith.addf %3, %5 : vector<32x256xf32>
    %7 = vector.shape_cast %6 : vector<32x256xf32> to vector<1x32x256xf32>
    %cst_6 = arith.constant dense<0.000000e+00> : vector<1xf32>
    %8 = vector.multi_reduction <add>, %7, %cst_6 [1, 2] : vector<1x32x256xf32> to vector<1xf32>
    %9 = vector.shape_cast %8 : vector<1xf32> to vector<1x1x1xf32>
    %10 = vector.extract %9[0, 0, 0] : f32 from vector<1x1x1xf32>
    %11 = arith.mulf %6, %6 : vector<32x256xf32>
    %12 = vector.shape_cast %11 : vector<32x256xf32> to vector<1x32x256xf32>
    %cst_7 = arith.constant dense<0.000000e+00> : vector<1xf32>
    %13 = vector.multi_reduction <add>, %12, %cst_7 [1, 2] : vector<1x32x256xf32> to vector<1xf32>
    %14 = vector.shape_cast %13 : vector<1xf32> to vector<1x1x1xf32>
    %15 = vector.extract %14[0, 0, 0] : f32 from vector<1x1x1xf32>
    %cst_8 = arith.constant 1.22070313E-4 : f32
    %16 = arith.mulf %10, %cst_8 : f32
    %cst_9 = arith.constant 1.22070313E-4 : f32
    %17 = arith.mulf %15, %cst_9 : f32
    %18 = arith.mulf %16, %16 : f32
    %19 = arith.subf %17, %18 : f32
    %20 = vector.broadcast %16 : f32 to vector<32x256xf32>
    %21 = arith.subf %6, %20 : vector<32x256xf32>
    %cst_10 = arith.constant 9.99999974E-6 : f32
    %22 = arith.addf %19, %cst_10 : f32
    %23 = math.rsqrt %22 : f32
    %24 = vector.broadcast %23 : f32 to vector<32x256xf32>
    %25 = arith.mulf %21, %24 : vector<32x256xf32>
    %cst_11 = arith.constant 0.000000e+00 : f32
    %26 = vector.broadcast %cst_11 : f32 to vector<32x256xf32>
    %27 = arith.maximumf %25, %26 : vector<32x256xf32>
    %c0_12 = arith.constant 0 : index
    %c0_13 = arith.constant 0 : index
    %c0_14 = arith.constant 0 : index
    %28 = vector.load %arg4[%c0_12, %c0_13, %c0_14] : memref<1x32x256xf32, #tpu.memory_space<vmem>>, vector<1x32x256xf32>
    %29 = vector.shape_cast %28 : vector<1x32x256xf32> to vector<32x256xf32>
    %30 = vector.shape_cast %27 : vector<32x256xf32> to vector<1x32x256xf32>
    tpu.vector_store %arg4[%c0_12, %c0_13, %c0_14], %30 {strides = array<i32>} : memref<1x32x256xf32, #tpu.memory_space<vmem>>, vector<1x32x256xf32>,
    return
  }
  func.func @transform_0(%arg0: i32) -> (i32, i32, i32) {
    %c0_i32 = arith.constant 0 : i32
    %c0_i32_0 = arith.constant 0 : i32
    %c0_i32_1 = arith.constant 0 : i32
    return %arg0, %c0_i32, %c0_i32_0 : i32, i32, i32
  }
  func.func @transform_1(%arg0: i32) -> (i32, i32) {
    %c0_i32 = arith.constant 0 : i32
    %c0_i32_0 = arith.constant 0 : i32
    %c0_i32_1 = arith.constant 0 : i32
    return %c0_i32, %c0_i32_0 : i32, i32
  }
  func.func @transform_2(%arg0: i32) -> (i32, i32) {
    %c0_i32 = arith.constant 0 : i32
    %c0_i32_0 = arith.constant 0 : i32
    %c0_i32_1 = arith.constant 0 : i32
    return %c0_i32, %c0_i32_0 : i32, i32
  }
  func.func @transform_3(%arg0: i32) -> (i32, i32, i32) {
    %c0_i32 = arith.constant 0 : i32
    %c0_i32_0 = arith.constant 0 : i32
    %c0_i32_1 = arith.constant 0 : i32
    return %arg0, %c0_i32, %c0_i32_0 : i32, i32, i32
  }
}

</mosaic_0001>

<bundles_post_ra>
// kernel: tpu_custom_call.1
= control target key start
LH: loop header
LB: loop body
LE: loop exit
PB: predicated region body
PF: predicated region fallthrough
CT: control target
= control target key end

     0   :  { %8 = vsyncpa [#allocation3], 0  ;;  %s1166_s0 = inlined_call_operand.hbm [shape: bf16[2,144,256], index: 0, kind: input, shape index: {}]   ;;  %s1167_s1 = inlined_call_operand.vmem [shape: bf16[32,144], index: 1, kind: input, shape index: {}]   ;;  %s1168_s2 = inlined_call_operand.vmem [shape: f32[32,1], index: 2, kind: input, shape index: {}]   ;;  %s1169_s3 = inlined_call_operand.hbm [shape: f32[2,32,256], index: 3, kind: output, shape index: {}]  }
   0x1   :  { %10 = vsyncpa [#allocation3 + $0x1], 0 }
   0x2   :  { %11 = vsyncpa [#allocation4], 0 }
   0x3   :  { %13 = vsyncpa [#allocation4 + $0x1], 0  ;;  %s922_s12 = smov 0   ;;  %s924_s13 = smov 0  }
   0x4   :  { %s926_s14 = smov 0   ;;  %s928_s15 = smov 0  }
   0x5 LB: > { %s943_s16 = sadd.s32 4294967295, %s895_s15   ;;  %s609_s17 = sadd.s32 4294967294, %s895_s15   ;;  %s895_s15 = sphi %s928_s15, %s1177_s15   ;;  %s891_s14 = sphi %s926_s14, %s1176_s14   ;;  %s887_s13 = sphi %s924_s13, %s1175_s13   ;;  %s883_s12 = sphi %s922_s12, %s1174_s12  }
   0x6   : > { %s947_s18 = sadd.s32 1, %s895_s15   ;;  %s26_s19 = sadd.s32 1, %s891_s14 }
   0x7   : > { %s23_s20 = ssub.s32 %s895_s15, %s947_s18  ;;  %p33_p0 = scmp.ne.s32.totalorder %s891_s14, %s887_s13 }
   0x8   : > { %p24_p1 = scmp.eq.s32.totalorder %s23_s20, 0  ;;  %p34_p2 = scmp.eq.s32.totalorder %s895_s15, 0 }
   0x9   : > { %p39_p3 = scmp.ne.s32.totalorder %s887_s13, %s883_s12  ;;  %p40_p4 = scmp.eq.s32.totalorder %s943_s16, 0 }
   0xa   : > { %s959_s21 = scalar_select %p24_p1, %s891_s14, %s26_s19  }
   0xb   : > { %p35_p5 = por %p34_p2, %p33_p0  ;;  %p961_p6 = por %p40_p4, %p39_p3 }
   0xc   : > { %p105_p7 = scmp.eq.s32.totalorder %s943_s16, 1  ;;  %p111_p8 = scmp.eq.s32.totalorder %s609_s17, 1 }
   0xd   : > { %p611_p9 = scmp.ge.s32.totalorder %s895_s15, 2  ;;  %p756_p10 = scmp.lt.s32.totalorder %s895_s15, 2 }
   0xe   : > { %p968_p11 = por %p105_p7, %p33_p0  ;;  %p972_p12 = por %p111_p8, %p39_p3 }
   0xf   : > { %s137_s25 = sand.u32 1, %s891_s14   ;;  %s736_s26 = smul.u32 144, %s895_s15 }
  0x10   : > { %s735_s27 = smul.u32 144, %s137_s25  ;;  %p981_p13 = pnand %p756_p10, %p35_p5 }
  0x11   : > { %s146_s30 = scalar_lea.hbm %s1166_s0, %s736_s26  ;;  %s138_s8 = scalar_lea.sflag [#allocation3], %s137_s25 }
  0x12   : > { %s147_s5 = sshll.u32 %s146_s30, 4  ;;  %s141_s6 = scalar_lea.vmem [#allocation2], %s735_s27  ;;  %s148_s5 = int_to_ptr.hbm [resolvable:$true] %s147_s5 }
  0x13   : > { %s149_s7 = sshll.u32 %s141_s6, 4  ;;  %s799_s9 = sshra.s32 %s148_s5, 4  ;;  %s150_s7 = int_to_ptr.vmem [resolvable:$true] %s149_s7  ;;  %s800_s9 = int_to_ptr.hbm [resolvable:$true] %s799_s9 }
  0x14   : > { %s801_s10 = scalar_lea.hbm %s800_s9, 144  ;;  %p803_p1 = pneg %p981_p13 }
  0x15   : > { %p802_p0 = scmp.ne.s32.totalorder %s800_s9, %s801_s10  ;;  %s806_s19 = scalar_lea.hbm %s1166_s0, 288 }
  0x16   : > { %p807_p4 = scmp.lt.s32.totalorder %s800_s9, %s1166_s0  ;;  %p808_p5 = scmp.lt.s32.totalorder %s806_s19, %s801_s10 }
  0x17   : > { %p804_p2 = pnand %p803_p1, %p802_p0 }
  0x18   : > { %p809_p7 = por %p808_p5, %p807_p4 }
  0x19   : > { %p805_p3 = pneg %p804_p2 }
  0x1b   : > { %p810_p8 = pnand %p809_p7, %p805_p3 }
  0x1d   : > { %813 = shalt.err (!%p810_p8)
}
  0x1e   : > { %s897_s25 = smov 128   ;;  %s898_s27 = smov 8  }
  0x1f   : > { %751 = dma.hbm_to_vmem [thread:$0]  (!%p981_p13), %s148_s5, 2304, %s150_s7, %s138_s8, %s897_s25, %s897_s25, %s898_s27  }
  0x20   : > { %p613_p10 = scmp.ge.s32.totalorder %s895_s15, 1  ;;  %p157_p0 = scmp.lt.s32.totalorder %s895_s15, 3 }
  0x22   : > { %p158_p1 = pnand %p613_p10, %p157_p0 }
  0x23   : > { %s998_s28 = sand.u32 (!%p158_p1), 1, %s887_s13  }
  0x24   : > { %161 = sbr.rel (%p158_p1) target bundleno = 516 (0x204), region = 32  ;;  %s164_s30 = scalar_lea.sflag (!%p158_p1), [#allocation3], %s998_s28 }
  0x25   : > { %s737_s29 = smul.u32 (!%p158_p1), 144, %s998_s28 }
  0x27   : > { %s1002_s6 = scalar_lea.vmem (!%p158_p1), [#allocation2], %s737_s29 }
  0x29   : > { %874 = dma.done.wait (%p961_p6), %s164_s30, 2304  }
  0x2a   : > { %876 = vsyncadd (%p961_p6), %s164_s30, 4294964992  ;;  %v689_v0 = vld [vmem:[%s1002_s6 + $0x70] sm:$0xf]  ;;  %v727_v1 = vld [vmem:[%s1002_s6 + $0x74] sm:$0xf0]  ;;  %vm346_vm0 = vcmask 130048  }
  0x2b   : > { %v726_v2 = vld [vmem:[%s1002_s6 + $0x74] sm:$0xf]  ;;  %v690_v3 = vor.u32 %v727_v1, %v689_v0  ;;  %v691_v4 = vld [vmem:[%s1002_s6 + $0x78] sm:$0xf0]  ;;  %v681_v5 = vld [vmem:[%s1002_s6 + $0x60] sm:$0xf] }
  0x2c   : > { %v725_v6 = vld [vmem:[%s1002_s6 + $0x64] sm:$0xf0]  ;;  %v694_v7 = vor.u32 %v726_v2, %v691_v4  ;;  %v724_v8 = vld [vmem:[%s1002_s6 + $0x64] sm:$0xf]  ;;  %v683_v9 = vld [vmem:[%s1002_s6 + $0x68] sm:$0xf0] }
  0x2d   : > { %353 = vmatpush.bf16.msra.mxu0 %v690_v3  ;;  %v682_v10 = vor.u32 %v725_v6, %v681_v5  ;;  %v686_v11 = vor.u32 %v724_v8, %v683_v9  ;;  %v673_v12 = vld [vmem:[%s1002_s6 + $0x50] sm:$0xf]  ;;  %v723_v13 = vld [vmem:[%s1002_s6 + $0x54] sm:$0xf0]  ;;  %v722_v14 = vld [vmem:[%s1002_s6 + $0x54] sm:$0xf] }
  0x2e   : > { %391 = vmatpush.bf16.msra.mxu2 %v694_v7  ;;  %v675_v15 = vld [vmem:[%s1002_s6 + $0x58] sm:$0xf0]  ;;  %v674_v16 = vor.u32 %v723_v13, %v673_v12  ;;  %v665_v17 = vld [vmem:[%s1002_s6 + $0x40] sm:$0xf]  ;;  %v721_v19 = vld [vmem:[%s1002_s6 + $0x44] sm:$0xf0] }
  0x2f   : > { %v678_v18 = vor.u32 %v722_v14, %v675_v15  ;;  %v728_v20 = vld [vmem:[%s1002_s6 + $0x84] sm:$0xf]  ;;  %v699_v21 = vld [vmem:[%s1002_s6 + $0x88] sm:$0xf0]  ;;  %v697_v27 = vld [vmem:[%s1002_s6 + $0x80] sm:$0xf]  ;;  %v666_v28 = vor.u32 %v721_v19, %v665_v17 }
  0x30   : > { %v720_v22 = vld [vmem:[%s1002_s6 + $0x44] sm:$0xf]  ;;  %v667_v23 = vld [vmem:[%s1002_s6 + $0x48] sm:$0xf0]  ;;  %v702_v24 = vor.u32 %v728_v20, %v699_v21  ;;  %v729_v30 = vld [vmem:[%s1002_s6 + $0x84] sm:$0xf0] }
  0x31   : > { %354 = vmatpush.bf16.msra.mxu0 %v682_v10  ;;  %v730_v25 = vld [vmem:[%s1167_s1 + $0x4] sm:$0xf]  ;;  %v619_v26 = vld [vmem:[%s1167_s1 + $0x8] sm:$0xf0]  ;;  %v670_v31 = vor.u32 %v720_v22, %v667_v23  ;;  %v657_v32 = vld [vmem:[%s1002_s6 + $0x30] sm:$0xf]  ;;  %v698_v34 = vor.u32 %v729_v30, %v697_v27 }
  0x32   : > { %392 = vmatpush.bf16.msra.mxu2 %v686_v11  ;;  %417 = vmatpush.bf16.msra.mxu3 %v702_v24  ;;  %v622_v29 = vor.u32 %v730_v25, %v619_v26  ;;  %v719_v33 = vld [vmem:[%s1002_s6 + $0x34] sm:$0xf0]  ;;  %v718_v35 = vld [vmem:[%s1002_s6 + $0x34] sm:$0xf]  ;;  %v659_v36 = vld [vmem:[%s1002_s6 + $0x38] sm:$0xf0] }
  0x33   : > { %v214_v37 = vld [vmem:[%s1168_s2] sm:$0xff]  ;;  %379 = vmatpush.bf16.msra.mxu1 %v698_v34  ;;  %v658_v38 = vor.u32 %v719_v33, %v657_v32  ;;  %v899_v39 = vmov 0   ;;  %v662_v40 = vor.u32 %v718_v35, %v659_v36  ;;  %v717_v42 = vld [vmem:[%s1002_s6 + $0x24] sm:$0xf0]  ;;  %v651_v44 = vld [vmem:[%s1002_s6 + $0x28] sm:$0xf0] }
  0x34   : > { %795 = vset.pattern.permute.xlu0 %v899_v39  ;;  %v649_v41 = vld [vmem:[%s1002_s6 + $0x20] sm:$0xf]  ;;  %v716_v43 = vld [vmem:[%s1002_s6 + $0x24] sm:$0xf]  ;;  %796 = vset.pattern.permute.xlu1 %v899_v39  ;;  %v641_v48 = vld [vmem:[%s1002_s6 + $0x10] sm:$0xf] }
  0x35   : > { %355 = vmatpush.bf16.msra.mxu0 %v674_v16  ;;  %705 = vmatmul.msk.bf16.vlgmr.msra.gmra.mxu3 %vm346_vm0, %v622_v29  ;;  %v650_v45 = vor.u32 %v717_v42, %v649_v41  ;;  %v216_v46 = vld [vmem:[%s1168_s2 + $0x10] sm:$0xff]  ;;  %v654_v47 = vor.u32 %v716_v43, %v651_v44  ;;  %v715_v49 = vld [vmem:[%s1002_s6 + $0x14] sm:$0xf0]  ;;  %v643_v51 = vld [vmem:[%s1002_s6 + $0x18] sm:$0xf0]  ;;  %s614_s29 = sshll.u32 %s998_s28, 6 }
  0x36   : > { %393 = vmatpush.bf16.msra.mxu2 %v678_v18  ;;  %220 = vperm.xlu0 %795, %v214_v37   ;;  %v714_v50 = vld [vmem:[%s1002_s6 + $0x14] sm:$0xf]  ;;  %v215_v52 = vld [vmem:[%s1168_s2 + $0x8] sm:$0xff]  ;;  %v642_v53 = vor.u32 %v715_v49, %v641_v48  ;;  %v627_v55 = vld [vmem:[%s1167_s1 + $0x18] sm:$0xf0]  ;;  %s734_s22 = sshll.u32 %s943_s16, 6 }
  0x37   : > { %703 = vmatmul.msk.bf16.vlgmr.msra.gmra.mxu1 %vm346_vm0, %v622_v29  ;;  %230 = vperm.xlu1 %796, %v216_v46   ;;  %v732_v54 = vld [vmem:[%s1167_s1 + $0x14] sm:$0xf]  ;;  %v646_v56 = vor.u32 %v714_v50, %v643_v51  ;;  %v633_v57 = vld [vmem:[%s1002_s6] sm:$0xf]  ;;  %v713_v58 = vld [vmem:[%s1002_s6 + $0x4] sm:$0xf0]  ;;  %s532_s7 = scalar_lea.hbm %s1169_s3, %s734_s22 }
  0x38   : > { %v712_v59 = vld [vmem:[%s1002_s6 + $0x4] sm:$0xf]  ;;  %v635_v60 = vld [vmem:[%s1002_s6 + $0x8] sm:$0xf0]  ;;  %v630_v62 = vor.u32 %v732_v54, %v627_v55  ;;  %v634_v63 = vor.u32 %v713_v58, %v633_v57  ;;  %v617_v0 = vld [vmem:[%s1167_s1] sm:$0xf] }
  0x39   : > { %356 = vmatpush.bf16.msra.mxu0 %v666_v28  ;;  %v217_v61 = vld [vmem:[%s1168_s2 + $0x18] sm:$0xff]  ;;  %v731_v1 = vld [vmem:[%s1167_s1 + $0x4] sm:$0xf0]  ;;  %v638_v2 = vor.u32 %v712_v59, %v635_v60  ;;  %v625_v4 = vld [vmem:[%s1167_s1 + $0x10] sm:$0xf]  ;;  %s190_s16 = scalar_lea.vmem [#allocation5], %s614_s29 }
  0x3a   : > { %394 = vmatpush.bf16.msra.mxu2 %v670_v31  ;;  %v618_v3 = vor.u32 %v731_v1, %v617_v0  ;;  %v733_v5 = vld [vmem:[%s1167_s1 + $0x14] sm:$0xf0]  ;;  %s533_s6 = sshll.u32 %s190_s16, 4  ;;  %s535_s8 = sshll.u32 %s532_s7, 4  ;;  %s534_s6 = int_to_ptr.vmem [resolvable:$true] %s533_s6  ;;  %s536_s8 = int_to_ptr.hbm [resolvable:$true] %s535_s8 }
  0x3b   : > { %v626_v6 = vor.u32 %v733_v5, %v625_v4  ;;  %s521_s9 = scalar_lea.sflag [#allocation4], %s998_s28  ;;  %s843_s10 = sshra.s32 %s536_s8, 4  ;;  %s844_s10 = int_to_ptr.hbm [resolvable:$true] %s843_s10 }
  0x3c   : > { %p850_p3 = scmp.lt.s32.totalorder %s844_s10, %s1169_s3 }
  0x3d   : > { %357 = vmatpush.bf16.msra.mxu0 %v658_v38 }
  0x3e   : > { %395 = vmatpush.bf16.msra.mxu2 %v662_v40  ;;  %225 = vperm.xlu0 %795, %v215_v52  }
  0x3f   : > { %235 = vperm.xlu1 %796, %v217_v61  }
  0x41   : > { %358 = vmatpush.bf16.msra.mxu0 %v650_v45 }
  0x42   : > { %396 = vmatpush.bf16.msra.mxu2 %v654_v47 }
  0x45   : > { %359 = vmatpush.bf16.msra.mxu0 %v642_v53  ;;  %706 = vmatmul.msk.bf16.gmra.mxu3 %vm346_vm0, %v630_v62 }
  0x46   : > { %397 = vmatpush.bf16.msra.mxu2 %v646_v56 }
  0x47   : > { %704 = vmatmul.msk.bf16.gmra.mxu1 %vm346_vm0, %v630_v62 }
  0x49   : > { %360 = vmatpush.bf16.msra.mxu0 %v634_v63 }
  0x4a   : > { %398 = vmatpush.bf16.msra.mxu2 %v638_v2 }
  0x4c   : > { %361 = vmatmul.bf16.vlgmr.msra.gmra.mxu0 %v618_v3 }
  0x4d   : > { %399 = vmatmul.bf16.vlgmr.msra.gmra.mxu2 %v618_v3 }
  0x5c   : > { %366 = vmatmul.bf16.gmra.mxu0 %v626_v6 }
  0x5d   : > { %404 = vmatmul.bf16.gmra.mxu2 %v626_v6 }
  0xa8   : > { %v221_v9 = vpop.permute.xlu0 %220 }
  0xa9   : > { %v231_v20 = vpop.permute.xlu1 %230 }
  0xb0   : > { %v226_v15 = vpop.permute.xlu0 %225 }
  0xb1   : > { %v236_v39 = vpop.permute.xlu1 %235 }
  0xb4   : > { %v381_v7 = vpop.f32.mrf.mxu1 }
  0xb8   : > { %v419_v10 = vpop.f32.mrf.mxu3 }
  0xbc   : > { %v383_v13 = vpop.f32.mrf.mxu1 }
  0xc0   : > { %v421_v17 = vpop.f32.mrf.mxu3 }
  0xc4   : > { %v386_v27 = vpop.f32.mrf.mxu1 }
  0xc8   : > { %v424_v32 = vpop.f32.mrf.mxu3 }
  0xc9   : > { %v362_v8 = vpop.f32.mrf.mxu0 }
  0xca   : > { %v363_v16 = vadd.f32 %v362_v8, %v221_v9 }
  0xcc   : > { %v1086_v22 = vadd.f32 %v381_v7, %v363_v16  ;;  %v388_v46 = vpop.f32.mrf.mxu1 }
  0xce   : > { %v445_v34 = vmul.f32 %v1086_v22, %v1086_v22 }
  0xd0   : > { %v400_v11 = vpop.f32.mrf.mxu2  ;;  %v426_v54 = vpop.f32.mrf.mxu3 }
  0xd1   : > { %v364_v12 = vpop.f32.mrf.mxu0  ;;  %v401_v14 = vadd.f32 %v400_v11, %v221_v9 }
  0xd2   : > { %v365_v19 = vadd.f32 %v364_v12, %v226_v15 }
  0xd3   : > { %v1084_v18 = vadd.f32 %v419_v10, %v401_v14 }
  0xd4   : > { %v1090_v26 = vadd.f32 %v383_v13, %v365_v19 }
  0xd5   : > { %v429_v25 = vadd.f32 %v1084_v18, %v1086_v22  ;;  %v446_v30 = vmul.f32 %v1084_v18, %v1084_v18 }
  0xd6   : > { %v447_v41 = vmul.f32 %v1090_v26, %v1090_v26 }
  0xd7   : > { %v430_v31 = vadd.f32 %v429_v25, %v1090_v26  ;;  %v453_v40 = vadd.f32 %v446_v30, %v445_v34 }
  0xd8   : > { %v402_v21 = vpop.f32.mrf.mxu2 }
  0xd9   : > { %v403_v23 = vadd.f32 %v402_v21, %v226_v15  ;;  %v367_v24 = vpop.f32.mrf.mxu0  ;;  %v454_v47 = vadd.f32 %v453_v40, %v447_v41 }
  0xda   : > { %v368_v29 = vadd.f32 %v367_v24, %v231_v20 }
  0xdb   : > { %v1092_v28 = vadd.f32 %v421_v17, %v403_v23 }
  0xdc   : > { %v1100_v36 = vadd.f32 %v386_v27, %v368_v29 }
  0xdd   : > { %v431_v35 = vadd.f32 %v430_v31, %v1092_v28  ;;  %v448_v44 = vmul.f32 %v1092_v28, %v1092_v28 }
  0xde   : > { %v449_v52 = vmul.f32 %v1100_v36, %v1100_v36 }
  0xdf   : > { %v432_v45 = vadd.f32 %v431_v35, %v1100_v36  ;;  %v455_v51 = vadd.f32 %v454_v47, %v448_v44 }
  0xe0   : > { %v405_v33 = vpop.f32.mrf.mxu2 }
  0xe1   : > { %v406_v37 = vadd.f32 %v405_v33, %v231_v20  ;;  %v369_v38 = vpop.f32.mrf.mxu0  ;;  %v456_v59 = vadd.f32 %v455_v51, %v449_v52 }
  0xe2   : > { %v370_v43 = vadd.f32 %v369_v38, %v236_v39 }
  0xe3   : > { %v1104_v42 = vadd.f32 %v424_v32, %v406_v37 }
  0xe4   : > { %v1109_v48 = vadd.f32 %v388_v46, %v370_v43 }
  0xe5   : > { %v433_v49 = vadd.f32 %v432_v45, %v1104_v42  ;;  %v450_v55 = vmul.f32 %v1104_v42, %v1104_v42 }
  0xe6   : > { %v451_v60 = vmul.f32 %v1109_v48, %v1109_v48 }
  0xe7   : > { %v434_v57 = vadd.f32 %v433_v49, %v1109_v48  ;;  %v457_v61 = vadd.f32 %v456_v59, %v450_v55 }
  0xe8   : > { %v407_v50 = vpop.f32.mrf.mxu2 }
  0xe9   : > { %v408_v53 = vadd.f32 %v407_v50, %v236_v39  ;;  %v458_v63 = vadd.f32 %v457_v61, %v451_v60 }
  0xeb   : > { %v1116_v56 = vadd.f32 %v426_v54, %v408_v53 }
  0xed   : > { %v435_v58 = vadd.f32 %v434_v57, %v1116_v56  ;;  %v452_v62 = vmul.f32 %v1116_v56, %v1116_v56 }
  0xef   : > { %436 = vadd.xlane.f32.xlu2 %v435_v58  ;;  %v459_v0 = vadd.f32 %v458_v63, %v452_v62 }
  0xf7   : > { %460 = vadd.xlane.f32.xlu2 %v459_v0 }
 0x162   : > { %v437_v1 = vpop.xlane.xlu2 %436 }
 0x163   : > { %v438_v2 = vrot.slane %v437_v1, 4 }
 0x165   : > { %v439_v3 = vadd.f32 %v438_v2, %v437_v1 }
 0x167   : > { %v440_v4 = vrot.slane %v439_v3, 2 }
 0x169   : > { %v441_v5 = vadd.f32 %v440_v4, %v439_v3 }
 0x16a   : > { %v461_v6 = vpop.xlane.xlu2 %460 }
 0x16b   : > { %v462_v7 = vrot.slane %v461_v6, 4  ;;  %v442_v8 = vrot.slane %v441_v5, 1 }
 0x16d   : > { %v463_v9 = vadd.f32 %v462_v7, %v461_v6  ;;  %v443_v10 = vadd.f32 %v442_v8, %v441_v5 }
 0x16f   : > { %v464_v11 = vrot.slane %v463_v9, 2  ;;  %738 = vpush %v443_v10 }
 0x171   : > { %v465_v12 = vadd.f32 %v464_v11, %v463_v9 }
 0x173   : > { %v466_v13 = vrot.slane %v465_v12, 1 }
 0x175   : > { %v467_v14 = vadd.f32 %v466_v13, %v465_v12 }
 0x177   : > { %740 = vpush %v467_v14 }
 0x1a0   : > { %s739_s11 = spop %738 }
 0x1a1   : > { %s469_s17 = smul.f32 0.00012207031, %s739_s11  ;;  %s845_s11 = scalar_lea.hbm %s844_s10, 64 }
 0x1a2   : > { %p846_p6 = scmp.ne.s32.totalorder %s844_s10, %s845_s11 }
 0x1a3   : > { %s471_s19 = smul.f32 %s469_s17, %s469_s17  ;;  %v473_v25 = vstv %s469_s17 }
 0x1a4   : > { %v474_v27 = vsub.f32 %v1086_v22, %v473_v25  ;;  %v475_v29 = vsub.f32 %v1084_v18, %v473_v25  ;;  %v476_v30 = vsub.f32 %v1090_v26, %v473_v25  ;;  %v477_v31 = vsub.f32 %v1092_v28, %v473_v25  ;;  %p847_p13 = pnand %p846_p6, %p968_p11 }
 0x1a5   : > { %v478_v32 = vsub.f32 %v1100_v36, %v473_v25  ;;  %v479_v33 = vsub.f32 %v1104_v42, %v473_v25  ;;  %v480_v34 = vsub.f32 %v1109_v48, %v473_v25  ;;  %v481_v22 = vsub.f32 %v1116_v56, %v473_v25 }
 0x1a6   : > { %p848_p2 = pneg %p847_p13 }
 0x1a8   : > { %s741_s20 = spop %740 }
 0x1a9   : > { %s470_s26 = smul.f32 0.00012207031, %s741_s20  ;;  %s849_s20 = scalar_lea.hbm %s1169_s3, 128 }
 0x1aa   : > { %p851_p4 = scmp.lt.s32.totalorder %s849_s20, %s845_s11 }
 0x1ab   : > { %s472_s25 = ssub.f32 %s470_s26, %s471_s19 }
 0x1ac   : > { %p852_p5 = por %p851_p4, %p850_p3 }
 0x1ad   : > { %s482_s27 = sadd.f32 1e-05, %s472_s25 }
 0x1ae   : > { %p853_p7 = pnand %p852_p5, %p848_p2 }
 0x1af   : > { %v483_v15 = vstv %s482_s27 }
 0x1b0   : > { %797 = vrsqrt.f32 %v483_v15  ;;  %vm490_vm2 = vweird.f32 %v483_v15 }
 0x1b6   : > { %v798_v16 = vpop.eup %797 }
 0x1b7   : > { %v485_v17 = vmul.f32 %v798_v16, %v483_v15  ;;  %vm491_vm1 = vweird.f32 %v798_v16 }
 0x1b8   : > { %vm492_vm3 = vmor %vm490_vm2, %vm491_vm1 }
 0x1b9   : > { %v486_v19 = vmul.f32 %v798_v16, %v485_v17 }
 0x1bb   : > { %v487_v20 = vmul.f32 0.5, %v486_v19 }
 0x1bd   : > { %v488_v21 = vsub.f32 1.5, %v487_v20 }
 0x1bf   : > { %v489_v23 = vmul.f32 %v798_v16, %v488_v21 }
 0x1c1   : > { %v493_v24 = vsel %vm492_vm3, %v798_v16, %v489_v23 }
 0x1c2   : > { %742 = vpush %v493_v24 }
 0x1f3   : > { %s743_s30 = spop %742 }
 0x1f4   : > { %v495_v35 = vstv %s743_s30 }
 0x1f5   : > { %v496_v37 = vmul.f32 %v495_v35, %v474_v27  ;;  %v497_v38 = vmul.f32 %v495_v35, %v475_v29  ;;  %v498_v39 = vmul.f32 %v495_v35, %v476_v30  ;;  %v499_v40 = vmul.f32 %v495_v35, %v477_v31 }
 0x1f6   : > { %v500_v18 = vmul.f32 %v495_v35, %v478_v32  ;;  %v501_v41 = vmul.f32 %v495_v35, %v479_v33  ;;  %v502_v26 = vmul.f32 %v495_v35, %v480_v34  ;;  %v503_v36 = vmul.f32 %v495_v35, %v481_v22 }
 0x1f7   : > { %v504_v43 = vmax.f32 %v496_v37, 0.0  ;;  %v505_v28 = vmax.f32 %v497_v38, 0.0  ;;  %v506_v44 = vmax.f32 %v498_v39, 0.0  ;;  %v507_v42 = vmax.f32 %v499_v40, 0.0 }
 0x1f8   : > { %v508_v45 = vmax.f32 %v500_v18, 0.0  ;;  %v509_v46 = vmax.f32 %v501_v41, 0.0  ;;  %v510_v47 = vmax.f32 %v502_v26, 0.0  ;;  %v511_v48 = vmax.f32 %v503_v36, 0.0 }
 0x1f9   : > { %512 = vst [vmem:[%s190_s16] sm:$0xff] %v504_v43 }
 0x1fa   : > { %513 = vst [vmem:[%s190_s16 + $0x8] sm:$0xff] %v505_v28 }
 0x1fb   : > { %514 = vst [vmem:[%s190_s16 + $0x10] sm:$0xff] %v506_v44 }
 0x1fc   : > { %515 = vst [vmem:[%s190_s16 + $0x18] sm:$0xff] %v507_v42 }
 0x1fd   : > { %516 = vst [vmem:[%s190_s16 + $0x20] sm:$0xff] %v508_v45 }
 0x1fe   : > { %517 = vst [vmem:[%s190_s16 + $0x28] sm:$0xff] %v509_v46 }
 0x1ff   : > { %518 = vst [vmem:[%s190_s16 + $0x30] sm:$0xff] %v510_v47 }
 0x200   : > { %519 = vst [vmem:[%s190_s16 + $0x38] sm:$0xff] %v511_v48 }
 0x201   : > { %856 = shalt.err (!%p853_p7)
}
 0x202   : > { %s900_s28 = smov 256   ;;  %s901_s27 = smov 16  }
 0x203   : > { %746 = dma.vmem_to_hbm [thread:$0]  (%p968_p11), %s534_s6, 1024, %s536_s8, %s521_s9, %s900_s28, %s900_s28, %s901_s27  }
 0x204 PF: > { %s550_s29 = sand.u32 1, %s883_s12   ;;  %p753_p8 = pnand %p611_p9, %p972_p12 }
 0x205   : > { %s551_s30 = scalar_lea.sflag [#allocation4], %s550_s29 }
 0x206   : > { %p754_p10 = pneg %p753_p8 }
 0x208   : > { %878 = dma.done.wait (%p754_p10), %s551_s30, 1024  }
 0x209   : > { %880 = vsyncadd (%p754_p10), %s551_s30, 4294966272  ;;  %p16_p0 = scmp.ge.s32.totalorder %s947_s18, 4   ;;  %s1174_s12 = smov %s887_s13 }
 0x20a   : > { %s1175_s13 = smov %s891_s14  ;;  %s1176_s14 = smov %s959_s21 }
 0x20b   : > { %s1177_s15 = smov %s947_s18  ;;  %18 = sbr.rel (!%p16_p0) target bundleno = 5 (0x5), region = 77 }
 0x210   :  { %557 = vsyncpa [#allocation3], 1 }
 0x211   :  { %559 = vsyncpa [#allocation3 + $0x1], 1 }
 0x212   :  { %560 = vsyncpa [#allocation4], 1 }
 0x213   :  { %562 = vsyncpa [#allocation4 + $0x1], 1 }

</bundles_post_ra>
